<compile_context>
chip_gen: v6e
topology: v6e:2x2x1
jax: 0.10.0
libtpu: 0.0.40
codegen_flags: <defaults>
</compile_context>

<pallas_src>
import functools
import math

import jax
import jax.numpy as jnp
from jax.experimental import pallas as pl
from jax.experimental.pallas import tpu as pltpu

_NEG_LOG_EPS = -math.log(1e-4)            # -log(one-hot clamp) = 9.2103...
_TARGET_TILE_BYTES = 4 * 1024 * 1024      # pred bytes per pipeline buffer
_VMEM_LIMIT_BYTES = 48 * 1024 * 1024      # safe on v5e/v6e/v7x


def _round_up(x, m):
    return (x + m - 1) // m * m


def _rce_kernel_classes_on_sublanes(pred_ref, labels_ref, out_ref, *, neg_log_eps):
    """pred block (C, TB): classes on sublanes, batch on lanes (C < 128 path)."""
    p = pred_ref[...].astype(jnp.float32)                      # (C, TB)
    m = jnp.max(p, axis=0, keepdims=True)                      # (1, TB)
    e = jnp.exp(p - m)
    inv = pl.reciprocal(jnp.sum(e, axis=0, keepdims=True), approx=True)
    sm = jnp.clip(e * inv, 1e-7, 1.0)                          # (C, TB)
    labels = labels_ref[...]                                   # (1, TB) int32
    cls = jax.lax.broadcasted_iota(jnp.int32, p.shape, 0)      # (C, TB)
    # Sum of clipped-softmax over the NON-label classes (single reduction).
    off_label = jnp.sum(jnp.where(cls == labels, 0.0, sm), axis=0, keepdims=True)
    out_ref[...] = neg_log_eps * off_label                     # (1, TB)


def _rce_kernel_classes_on_lanes(pred_ref, labels_ref, out_ref, *, neg_log_eps):
    """pred block (TB, C): batch on sublanes, classes on lanes (C >= 128 path)."""
    p = pred_ref[...].astype(jnp.float32)                      # (TB, C)
    m = jnp.max(p, axis=1, keepdims=True)                      # (TB, 1)
    e = jnp.exp(p - m)
    inv = pl.reciprocal(jnp.sum(e, axis=1, keepdims=True), approx=True)
    sm = jnp.clip(e * inv, 1e-7, 1.0)                          # (TB, C)
    labels = labels_ref[...]                                   # (TB, 1) int32
    cls = jax.lax.broadcasted_iota(jnp.int32, p.shape, 1)      # (TB, C)
    off_label = jnp.sum(jnp.where(cls == labels, 0.0, sm), axis=1, keepdims=True)
    out_ref[...] = neg_log_eps * off_label                     # (TB, 1)


def reverse_cross_entropy(pred, labels, num_classes, scale=1.0,
                          tile_b=None, target_tile_bytes=_TARGET_TILE_BYTES):
    """pred: (N, C) float32/bfloat16 logits, labels: (N,) int -> scalar f32."""
    n, c = pred.shape
    assert c == num_classes
    labels = labels.astype(jnp.int32)
    itemsize = pred.dtype.itemsize

    if tile_b is None:
        tile_b = max(128, (target_tile_bytes // (c * itemsize)) // 128 * 128)
    tile_b = min(tile_b, _round_up(n, 128))
    n_pad = _round_up(n, tile_b)

    if c < 128:
        # Batch on the lane axis: pred -> (C, N_pad), labels -> (1, N_pad).
        pred_k = jnp.pad(pred.T, ((0, 0), (0, n_pad - n)))
        labels_k = jnp.pad(labels, (0, n_pad - n)).reshape(1, n_pad)
        kernel = functools.partial(_rce_kernel_classes_on_sublanes,
                                   neg_log_eps=_NEG_LOG_EPS)
        in_specs = [
            pl.BlockSpec((c, tile_b), lambda i: (0, i)),
            pl.BlockSpec((1, tile_b), lambda i: (0, i)),
        ]
        out_shape = jax.ShapeDtypeStruct((1, n_pad), jnp.float32)
        out_spec = pl.BlockSpec((1, tile_b), lambda i: (0, i))
    else:
        # Classes already lane-dense: keep rows-on-sublanes layout.
        pred_k = jnp.pad(pred, ((0, n_pad - n), (0, 0)))
        labels_k = jnp.pad(labels, (0, n_pad - n)).reshape(n_pad, 1)
        kernel = functools.partial(_rce_kernel_classes_on_lanes,
                                   neg_log_eps=_NEG_LOG_EPS)
        in_specs = [
            pl.BlockSpec((tile_b, c), lambda i: (i, 0)),
            pl.BlockSpec((tile_b, 1), lambda i: (i, 0)),
        ]
        out_shape = jax.ShapeDtypeStruct((n_pad, 1), jnp.float32)
        out_spec = pl.BlockSpec((tile_b, 1), lambda i: (i, 0))

    rce = pl.pallas_call(
        kernel,
        out_shape=out_shape,
        grid_spec=pltpu.PrefetchScalarGridSpec(
            num_scalar_prefetch=0,
            grid=(n_pad // tile_b,),
            in_specs=in_specs,
            out_specs=out_spec,
        ),
        compiler_params=pltpu.CompilerParams(
            dimension_semantics=("parallel",),  # disjoint output blocks per step
            vmem_limit_bytes=_VMEM_LIMIT_BYTES,
        ),
    )(pred_k, labels_k)

    rce = rce.reshape(-1)[:n]                 # drop padded samples
    return jnp.float32(scale) * jnp.mean(rce)


def _reference(pred, labels, num_classes, scale=1.0):
    sm = jax.nn.softmax(pred.astype(jnp.float32), axis=1)
    sm = jnp.clip(sm, 1e-7, 1.0)
    oh = jax.nn.one_hot(labels, num_classes, dtype=jnp.float32)
    oh = jnp.clip(oh, 1e-4, 1.0)
    rce = -jnp.sum(sm * jnp.log(oh), axis=1)
    return scale * jnp.mean(rce)


if __name__ == "__main__":
    key = jax.random.PRNGKey(0)
    k1, k2, k3, k4, k5, k6 = jax.random.split(key, 6)

    # Tolerance is slightly loose because of pl.reciprocal(approx=True) in the
    # softmax denominator (EUP approximate path); ample for a scalar loss.

    # Small-C path (classes on sublanes, batch on lanes).
    N1, C1 = 16, 8
    pred1 = jax.random.normal(k1, (N1, C1), dtype=jnp.float32)
    labels1 = jax.random.randint(k2, (N1,), 0, C1, dtype=jnp.int32)
    out1 = jax.block_until_ready(reverse_cross_entropy(pred1, labels1, C1, scale=1.0))
    ref1 = _reference(pred1, labels1, C1, 1.0)
    assert jnp.allclose(out1, ref1, rtol=1e-3, atol=1e-3), (out1, ref1)

    # Small-C path with non-power-of-two classes (CIFAR-10 like).
    N2, C2 = 64, 10
    pred2 = jax.random.normal(k3, (N2, C2), dtype=jnp.float32)
    labels2 = jax.random.randint(k4, (N2,), 0, C2, dtype=jnp.int32)
    out2 = jax.block_until_ready(reverse_cross_entropy(pred2, labels2, C2, scale=2.0))
    ref2 = _reference(pred2, labels2, C2, 2.0)
    assert jnp.allclose(out2, ref2, rtol=1e-3, atol=1e-3), (out2, ref2)

    # Large-C path (classes on lanes).
    N3, C3 = 256, 128
    pred3 = jax.random.normal(k5, (N3, C3), dtype=jnp.float32)
    labels3 = jax.random.randint(k6, (N3,), 0, C3, dtype=jnp.int32)
    out3 = jax.block_until_ready(reverse_cross_entropy(pred3, labels3, C3, scale=0.5))
    ref3 = _reference(pred3, labels3, C3, 0.5)
    assert jnp.allclose(out3, ref3, rtol=1e-3, atol=1e-3), (out3, ref3)

    print("KERNEL_OK")
</pallas_src>

<mosaic_0001>
module attributes {stable_mosaic.version = 11 : i64} {
  func.func @_rce_kernel_classes_on_sublanes(%arg0: i32, %arg1: memref<8x128xf32, #tpu.memory_space<vmem>>, %arg2: memref<1x128xi32, #tpu.memory_space<vmem>>, %arg3: memref<1x128xf32, #tpu.memory_space<vmem>>) attributes {dimension_semantics = [#tpu.dimension_semantics<parallel>], iteration_bounds = array<i64: 1>, scalar_prefetch = 0 : i64, scratch_operands = 0 : i64, tpu.core_type = #tpu.core_type<tc>, window_params = [{transform_indices = @transform_0, window_bounds = array<i64: 8, 128>}, {transform_indices = @transform_1, window_bounds = array<i64: 1, 128>}, {transform_indices = @transform_2, window_bounds = array<i64: 1, 128>}]} {
    %c0 = arith.constant 0 : index
    %c0_0 = arith.constant 0 : index
    %0 = vector.load %arg1[%c0, %c0_0] : memref<8x128xf32, #tpu.memory_space<vmem>>, vector<8x128xf32>
    %cst = arith.constant dense<0xFF800000> : vector<128xf32>
    %1 = vector.multi_reduction <maximumf>, %0, %cst [0] : vector<8x128xf32> to vector<128xf32>
    %2 = vector.shape_cast %1 : vector<128xf32> to vector<1x128xf32>
    %3 = vector.broadcast %2 : vector<1x128xf32> to vector<8x128xf32>
    %4 = arith.subf %0, %3 : vector<8x128xf32>
    %5 = math.exp %4 : vector<8x128xf32>
    %cst_1 = arith.constant dense<0.000000e+00> : vector<128xf32>
    %6 = vector.multi_reduction <add>, %5, %cst_1 [0] : vector<8x128xf32> to vector<128xf32>
    %7 = vector.shape_cast %6 : vector<128xf32> to vector<1x128xf32>
    %8 = tpu.reciprocal %7 {approx = true} : vector<1x128xf32> -> vector<1x128xf32>
    %9 = vector.broadcast %8 : vector<1x128xf32> to vector<8x128xf32>
    %10 = arith.mulf %5, %9 : vector<8x128xf32>
    %cst_2 = arith.constant 1.000000e-07 : f32
    %cst_3 = arith.constant 1.000000e+00 : f32
    %11 = vector.broadcast %cst_2 : f32 to vector<8x128xf32>
    %12 = arith.maximumf %11, %10 : vector<8x128xf32>
    %13 = vector.broadcast %cst_3 : f32 to vector<8x128xf32>
    %14 = arith.minimumf %13, %12 : vector<8x128xf32>
    %c0_4 = arith.constant 0 : index
    %c0_5 = arith.constant 0 : index
    %15 = vector.load %arg2[%c0_4, %c0_5] : memref<1x128xi32, #tpu.memory_space<vmem>>, vector<1x128xi32>
    %16 = tpu.iota {dimensions = array<i32: 0>} : vector<8x128xi32>
    %17 = vector.broadcast %15 : vector<1x128xi32> to vector<8x128xi32>
    %18 = arith.cmpi eq, %16, %17 : vector<8x128xi32>
    %cst_6 = arith.constant 0.000000e+00 : f32
    %19 = vector.broadcast %cst_6 : f32 to vector<8x128xf32>
    %20 = arith.select %18, %19, %14 : vector<8x128xi1>, vector<8x128xf32>
    %cst_7 = arith.constant dense<0.000000e+00> : vector<128xf32>
    %21 = vector.multi_reduction <add>, %20, %cst_7 [0] : vector<8x128xf32> to vector<128xf32>
    %22 = vector.shape_cast %21 : vector<128xf32> to vector<1x128xf32>
    %cst_8 = arith.constant 9.21034049 : f32
    %23 = vector.broadcast %cst_8 : f32 to vector<1x128xf32>
    %24 = arith.mulf %23, %22 : vector<1x128xf32>
    %c0_9 = arith.constant 0 : index
    %c0_10 = arith.constant 0 : index
    %25 = vector.load %arg3[%c0_9, %c0_10] : memref<1x128xf32, #tpu.memory_space<vmem>>, vector<1x128xf32>
    tpu.vector_store %arg3[%c0_9, %c0_10], %24 {strides = array<i32>} : memref<1x128xf32, #tpu.memory_space<vmem>>, vector<1x128xf32>,
    return
  }
  func.func @transform_0(%arg0: i32) -> (i32, i32) {
    %c0_i32 = arith.constant 0 : i32
    %c0_i32_0 = arith.constant 0 : i32
    return %c0_i32, %arg0 : i32, i32
  }
  func.func @transform_1(%arg0: i32) -> (i32, i32) {
    %c0_i32 = arith.constant 0 : i32
    %c0_i32_0 = arith.constant 0 : i32
    return %c0_i32, %arg0 : i32, i32
  }
  func.func @transform_2(%arg0: i32) -> (i32, i32) {
    %c0_i32 = arith.constant 0 : i32
    %c0_i32_0 = arith.constant 0 : i32
    return %c0_i32, %arg0 : i32, i32
  }
}

</mosaic_0001>

<bundles_post_ra>
// kernel: tpu_custom_call.1
= control target key start
LH: loop header
LB: loop body
LE: loop exit
PB: predicated region body
PF: predicated region fallthrough
CT: control target
= control target key end

     0   :  { %7 = vsyncpa [#allocation3], 0  ;;  %s153_s0 = inlined_call_operand.hbm [shape: f32[8,128], index: 0, kind: input, shape index: {}]   ;;  %s154_s1 = inlined_call_operand.vmem [shape: s32[1,128], index: 1, kind: input, shape index: {}]   ;;  %s155_s2 = inlined_call_operand.hbm [shape: f32[1,128], index: 2, kind: output, shape index: {}]  }
   0x1   :  { %8 = vsyncpa [#allocation4], 0  ;;  %s127_s9 = smov [#allocation2]  }
   0x2   :  { %s15_s10 = sshll.u32 %s127_s9, 4  ;;  %s16_s10 = int_to_ptr.vmem [resolvable:$true] %s15_s10 }
   0x3   :  { %s91_s11 = scalar_lea.vmem %s16_s10, 128  ;;  %p96_p1 = scmp.lt.s32.totalorder %s16_s10, %s16_s10 }
   0x4   :  { %p92_p0 = scmp.ne.s32.totalorder %s16_s10, %s91_s11  ;;  %p97_p2 = scmp.lt.s32.totalorder %s91_s11, %s91_s11 }
   0x6   :  { %p98_p3 = por %p97_p2, %p96_p1 }
   0x8   :  { %p99_p4 = pnand %p98_p3, %p92_p0 }
   0xa   :  { %102 = shalt.err (!%p99_p4)
}
   0xb   :  { %18 = dma.hbm_to_vmem [thread:$0]  %s153_s0, 128, %s16_s10, [#allocation3]  }
   0xc   :  { %123 = dma.done.wait [#allocation3], 128  }
   0xd   :  { %124 = vsyncadd [#allocation3], 4294967168  ;;  %v24_v0 = vld [vmem:[#allocation2] sm:$0xff]  ;;  %v45_v16 = vlaneseq  ;;  %s128_s15 = smov [#allocation5]  }
   0xe   :  { %v25_v1 = vrot.slane %v24_v0, 4  ;;  %v76_v20 = vld [vmem:[%s154_s1] ss:$0 sm:$0xff]  ;;  %s67_s16 = sshll.u32 %s128_s15, 4  ;;  %s68_s16 = int_to_ptr.vmem [resolvable:$true] %s67_s16 }
   0xf   :  { %v46_v18 = vshrl.u32 %v45_v16, 7  ;;  %s103_s17 = scalar_lea.vmem %s68_s16, 16  ;;  %s107_s18 = scalar_lea.vmem %s68_s16, 32 }
  0x10   :  { %v26_v2 = vmax.f32 %v24_v0, %v25_v1  ;;  %p104_p5 = scmp.ne.s32.totalorder %s68_s16, %s103_s17  ;;  %p108_p6 = scmp.lt.s32.totalorder %s68_s16, %s68_s16 }
  0x11   :  { %vm51_vm0 = vcmp.eq.s32.totalorder %v46_v18, %v76_v20  ;;  %p109_p7 = scmp.lt.s32.totalorder %s107_s18, %s103_s17 }
  0x12   :  { %v27_v3 = vrot.slane %v26_v2, 2 }
  0x13   :  { %p110_p8 = por %p109_p7, %p108_p6 }
  0x14   :  { %v28_v4 = vmax.f32 %v26_v2, %v27_v3 }
  0x15   :  { %p111_p9 = pnand %p110_p8, %p104_p5 }
  0x16   :  { %v29_v5 = vrot.slane %v28_v4, 1 }
  0x18   :  { %v30_v6 = vmax.f32 %v28_v4, %v29_v5 }
  0x1a   :  { %v31_v7 = vsub.f32 %v24_v0, %v30_v6 }
  0x1c   :  { %v32_v8 = vmul.f32 1.442695, %v31_v7 }
  0x1e   :  { %79 = vpow2.f32 %v32_v8 }
  0x2b   :  { %v80_v9 = vpop.eup %79 }
  0x2c   :  { %v34_v10 = vrot.slane %v80_v9, 4 }
  0x2e   :  { %v35_v11 = vadd.f32 %v80_v9, %v34_v10 }
  0x30   :  { %v36_v12 = vrot.slane %v35_v11, 2 }
  0x32   :  { %v37_v13 = vadd.f32 %v36_v12, %v35_v11 }
  0x34   :  { %v38_v14 = vrot.slane %v37_v13, 1 }
  0x36   :  { %v39_v15 = vadd.f32 %v38_v14, %v37_v13 }
  0x38   :  { %81 = vrcp.f32 %v39_v15 }
  0x45   :  { %v82_v17 = vpop.eup %81 }
  0x46   :  { %v41_v19 = vmul.f32 %v82_v17, %v80_v9 }
  0x48   :  { %v42_v21 = vmax.f32 %v41_v19, 1e-07 }
  0x4a   :  { %v43_v22 = vmin.f32 %v42_v21, 1.0 }
  0x4c   :  { %v52_v23 = vsel %vm51_vm0, 0.0, %v43_v22 }
  0x4d   :  { %v53_v24 = vrot.slane %v52_v23, 4 }
  0x4f   :  { %v54_v25 = vadd.f32 %v53_v24, %v52_v23 }
  0x51   :  { %v55_v26 = vrot.slane %v54_v25, 2 }
  0x53   :  { %v56_v27 = vadd.f32 %v55_v26, %v54_v25 }
  0x55   :  { %v57_v28 = vrot.slane %v56_v27, 1 }
  0x57   :  { %v58_v29 = vadd.f32 %v57_v28, %v56_v27 }
  0x59   :  { %v59_v30 = vmul.f32 9.2103405, %v58_v29 }
  0x5b   :  { %60 = vst [vmem:[#allocation5] sm:$0x1] %v59_v30 }
  0x5c   :  { %114 = shalt.err (!%p111_p9)
}
  0x5d   :  { %70 = dma.vmem_to_hbm [thread:$0]  %s68_s16, 16, %s155_s2, [#allocation4]  }
  0x5e   :  { %125 = dma.done.wait [#allocation4], 16  }
  0x5f   :  { %126 = vsyncadd [#allocation4], 4294967280 }
  0x60   :  { %74 = vsyncpa [#allocation3], 1 }
  0x61   :  { %75 = vsyncpa [#allocation4], 1 }

</bundles_post_ra>
